<compile_context>
chip_gen: v6e
topology: v6e:2x2x1
jax: 0.10.0
libtpu: 0.0.40
codegen_flags: <defaults>
</compile_context>

<pallas_src>
import functools

import jax
import jax.numpy as jnp
from jax.experimental import pallas as pl
from jax.experimental.pallas import tpu as pltpu


LANE = 128  # TPU lane width: pad feature dims to multiples of this.


def _round_up(n, m):
    return ((n + m - 1) // m) * m


# --------------------------------------------------------------------------- #
# Kernel
# --------------------------------------------------------------------------- #
def _mlp_kernel(x_ref,
                w1_ref, b1_ref,
                w2_ref, b2_ref,
                w3_ref, b3_ref,
                w4_ref, b4_ref,
                w5_ref, b5_ref,
                o_ref):
    """Whole 5-layer MLP for one batch tile; weights fully resident in VMEM."""
    # f32 -> bf16 downcast fused into the kernel (x read from HBM only once).
    h = x_ref[...].astype(jnp.bfloat16)
    for w_ref, b_ref in ((w1_ref, b1_ref),
                         (w2_ref, b2_ref),
                         (w3_ref, b3_ref),
                         (w4_ref, b4_ref)):
        acc = jnp.dot(h, w_ref[...],                      # bf16 x bf16 -> f32 acc (MXU)
                      preferred_element_type=jnp.float32)
        acc = jnp.maximum(acc + b_ref[...], 0.0)          # Linear + ReLU in f32 (VPU)
        h = acc.astype(jnp.bfloat16)                      # bf16 input for next MXU op
    out = jnp.dot(h, w5_ref[...], preferred_element_type=jnp.float32)
    o_ref[...] = (out + b5_ref[...]).astype(o_ref.dtype)  # lane-dense (M_pad=128) store


# --------------------------------------------------------------------------- #
# Tiling / parameter preparation
# --------------------------------------------------------------------------- #
def _choose_block_b(B):
    """Pick the batch tile.

    256-aligned (MXU row dim on v6e/v7x; multiple of 128 for v5e, of 16 for
    bf16 sublane packing), capped at 512 rows (VMEM budget re-derived for
    v7x's 64 MiB), preferring >= 2 grid steps so v7x's two TensorCores can
    both be used via dimension_semantics=("parallel",).
    """
    ALIGN = 256
    MAX_BLOCK = 512
    if B < 2 * ALIGN:
        return B                                   # single resident tile, grid=(1,)
    cand = min(MAX_BLOCK, (B // 2) // ALIGN * ALIGN)
    while cand >= ALIGN:                           # 256-aligned divisor, >= 2 steps
        if B % cand == 0:
            return cand
        cand -= ALIGN
    for step in (16, 8):                           # fallback: smaller alignment
        cand = min(MAX_BLOCK, B // 2)
        cand -= cand % step
        while cand >= step:
            if B % cand == 0:
                return cand
            cand -= step
    return B                                       # last resort: one tall tile


def prepare_params(params):
    """One-time (host-side, outside jit) PyTorch -> kernel layout conversion.

    (out,in) f32 weights -> (in,out) bf16, zero-padded so hidden/output dims
    are multiples of 128 lanes; (out,) biases -> (1,out_pad) f32 zero-padded.
    Padded rows/cols are exactly zero, so padding stays zero through the
    Linear+ReLU chain and real outputs are bit-for-bit unaffected by it.

    Returns (flat_params, out_features).
    """
    w = {i: jnp.asarray(params[f"w{i}"]).T for i in range(1, 6)}          # (in, out)
    b = {i: jnp.asarray(params[f"b{i}"]).reshape(1, -1) for i in range(1, 6)}
    D, H = w[1].shape
    M = w[5].shape[1]
    assert D == H, "module requires input_size == hidden_size (fc2..fc4 reuse hidden)"
    H_pad = _round_up(H, LANE)
    M_pad = _round_up(M, LANE)

    def pad_to(a, rows, cols):
        return jnp.pad(a, ((0, rows - a.shape[0]), (0, cols - a.shape[1])))

    flat = []
    # fc1: keep the true input width D (no need to pad x); pad only the out dim.
    flat.append(pad_to(w[1], D, H_pad).astype(jnp.bfloat16))
    flat.append(pad_to(b[1], 1, H_pad).astype(jnp.float32))
    # fc2..fc4: (H, H) -> (H_pad, H_pad).
    for i in (2, 3, 4):
        flat.append(pad_to(w[i], H_pad, H_pad).astype(jnp.bfloat16))
        flat.append(pad_to(b[i], 1, H_pad).astype(jnp.float32))
    # fc5: (H, M) -> (H_pad, M_pad); padded output columns are exactly zero.
    flat.append(pad_to(w[5], H_pad, M_pad).astype(jnp.bfloat16))
    flat.append(pad_to(b[5], 1, M_pad).astype(jnp.float32))
    return tuple(flat), M


# --------------------------------------------------------------------------- #
# Forward
# --------------------------------------------------------------------------- #
@functools.partial(jax.jit,
                   static_argnames=("block_b", "out_features", "single_buffer_params"))
def _mlp_forward_jit(x, flat_params, *, block_b, out_features, single_buffer_params):
    B, D = x.shape
    H_pad = flat_params[0].shape[1]
    M_pad = flat_params[8].shape[1]
    assert B % block_b == 0

    grid = (B // block_b,)
    x_spec = pl.BlockSpec((block_b, D), lambda i: (i, 0))
    out_spec = pl.BlockSpec((block_b, M_pad), lambda i: (i, 0))
    # Weights / biases: whole array, same block every step -> stay resident.
    # Single-buffer them (their block index never changes) to halve weight VMEM.
    if single_buffer_params:
        param_specs = [pl.BlockSpec(a.shape, lambda i: (0, 0),
                                    pipeline_mode=pl.Buffered(1))
                       for a in flat_params]
    else:
        param_specs = [pl.BlockSpec(a.shape, lambda i: (0, 0)) for a in flat_params]

    # VMEM footprint -> explicit scoped-VMEM limit (default 16/32 MiB is low).
    param_bytes = sum(int(a.size) * a.dtype.itemsize for a in flat_params)
    param_buffers = 1 if single_buffer_params else 2
    tile_bytes = 2 * block_b * (D * 4 + M_pad * 4)        # double-buffered x / out tiles
    interm_bytes = block_b * H_pad * (4 + 4 + 2)          # ~2 live f32 + 1 bf16 activation
    footprint = param_buffers * param_bytes + tile_bytes + interm_bytes
    vmem_limit = int(min(max(2 * footprint + (1 << 20), 4 << 20), 48 << 20))

    flops = 2 * B * (D * H_pad + 3 * H_pad * H_pad + H_pad * M_pad)
    bytes_accessed = B * D * 4 + param_bytes + B * M_pad * 4
    cost = pl.CostEstimate(flops=flops, transcendentals=0,
                           bytes_accessed=bytes_accessed)

    out = pl.pallas_call(
        _mlp_kernel,
        out_shape=jax.ShapeDtypeStruct((B, M_pad), jnp.float32),
        grid_spec=pl.GridSpec(
            grid=grid,
            in_specs=[x_spec] + param_specs,
            out_specs=out_spec,
        ),
        compiler_params=pltpu.CompilerParams(
            dimension_semantics=("parallel",),
            vmem_limit_bytes=vmem_limit),
        cost_estimate=cost,
    )(x, *flat_params)

    if out_features is not None and out_features != M_pad:
        out = out[:, :out_features]                       # drop zero padding
    return out


def mlp_forward(x, flat_params, out_features=None, block_b=None):
    """x: (B, input_size) float32.  flat_params/out_features: prepare_params()."""
    if block_b is None:
        block_b = _choose_block_b(x.shape[0])
    try:
        return _mlp_forward_jit(x, flat_params, block_b=block_b,
                                out_features=out_features,
                                single_buffer_params=True)
    except Exception:
        # TODO(synk): some jax versions reject pipeline_mode on top-level
        # BlockSpecs; fall back to default double-buffered weights.
        return _mlp_forward_jit(x, flat_params, block_b=block_b,
                                out_features=out_features,
                                single_buffer_params=False)


# --------------------------------------------------------------------------- #
# Reference / demo
# --------------------------------------------------------------------------- #
def init_params(key, input_size, hidden_size, magnitudes):
    """Deterministic PyTorch-Linear-style init: U(-1/sqrt(fan_in), 1/sqrt(fan_in))."""
    dims = [(hidden_size, input_size),   # fc1
            (hidden_size, input_size),   # fc2
            (hidden_size, input_size),   # fc3
            (hidden_size, input_size),   # fc4
            (magnitudes, hidden_size)]   # fc5
    params = {}
    for i, (out_d, in_d) in enumerate(dims, start=1):
        key, kw, kb = jax.random.split(key, 3)
        bound = 1.0 / jnp.sqrt(in_d)
        params[f"w{i}"] = jax.random.uniform(kw, (out_d, in_d), jnp.float32,
                                             -bound, bound)
        params[f"b{i}"] = jax.random.uniform(kb, (out_d,), jnp.float32,
                                             -bound, bound)
    return params


def mlp_reference(x, params):
    """Pure-JAX f32 reference mirroring the PyTorch forward."""
    h = x
    for i in range(1, 5):
        h = jnp.maximum(h @ params[f"w{i}"].T + params[f"b{i}"], 0.0)
    return h @ params["w5"].T + params["b5"]


if __name__ == "__main__":
    key = jax.random.PRNGKey(0)
    input_size = 32
    hidden_size = 32          # must equal input_size (see module note above)
    magnitudes = 8
    batch = 16

    key, kx, kp = jax.random.split(key, 3)
    x = jax.random.normal(kx, (batch, input_size), jnp.float32)
    params = init_params(kp, input_size, hidden_size, magnitudes)
    flat_params, out_features = prepare_params(params)   # hoisted pad+transpose+cast

    out = mlp_forward(x, flat_params, out_features=out_features)
    out = jax.block_until_ready(out)

    ref = mlp_reference(x, params)
    assert out.shape == (batch, magnitudes)
    # bf16 MXU inputs (f32 accumulation) -> loose tolerance vs. the f32 reference.
    assert jnp.allclose(out, ref, atol=5e-2, rtol=5e-2), "mismatch vs reference"

    print("KERNEL_OK")
</pallas_src>

<mosaic_0001>
module attributes {stable_mosaic.version = 11 : i64} {
  func.func @_mlp_kernel(%arg0: i32, %arg1: memref<16x32xf32, #tpu.memory_space<vmem>>, %arg2: memref<32x128xbf16, #tpu.memory_space<vmem>>, %arg3: memref<1x128xf32, #tpu.memory_space<vmem>>, %arg4: memref<128x128xbf16, #tpu.memory_space<vmem>>, %arg5: memref<1x128xf32, #tpu.memory_space<vmem>>, %arg6: memref<128x128xbf16, #tpu.memory_space<vmem>>, %arg7: memref<1x128xf32, #tpu.memory_space<vmem>>, %arg8: memref<128x128xbf16, #tpu.memory_space<vmem>>, %arg9: memref<1x128xf32, #tpu.memory_space<vmem>>, %arg10: memref<128x128xbf16, #tpu.memory_space<vmem>>, %arg11: memref<1x128xf32, #tpu.memory_space<vmem>>, %arg12: memref<16x128xf32, #tpu.memory_space<vmem>>) attributes {dimension_semantics = [#tpu.dimension_semantics<parallel>], iteration_bounds = array<i64: 1>, scalar_prefetch = 0 : i64, scratch_operands = 0 : i64, tpu.core_type = #tpu.core_type<tc>, window_params = [{transform_indices = @transform_0, window_bounds = array<i64: 16, 32>}, {pipeline_mode = #tpu.pipeline_mode<synchronous>, transform_indices = @transform_1, window_bounds = array<i64: 32, 128>}, {pipeline_mode = #tpu.pipeline_mode<synchronous>, transform_indices = @transform_2, window_bounds = array<i64: 1, 128>}, {pipeline_mode = #tpu.pipeline_mode<synchronous>, transform_indices = @transform_3, window_bounds = array<i64: 128, 128>}, {pipeline_mode = #tpu.pipeline_mode<synchronous>, transform_indices = @transform_4, window_bounds = array<i64: 1, 128>}, {pipeline_mode = #tpu.pipeline_mode<synchronous>, transform_indices = @transform_5, window_bounds = array<i64: 128, 128>}, {pipeline_mode = #tpu.pipeline_mode<synchronous>, transform_indices = @transform_6, window_bounds = array<i64: 1, 128>}, {pipeline_mode = #tpu.pipeline_mode<synchronous>, transform_indices = @transform_7, window_bounds = array<i64: 128, 128>}, {pipeline_mode = #tpu.pipeline_mode<synchronous>, transform_indices = @transform_8, window_bounds = array<i64: 1, 128>}, {pipeline_mode = #tpu.pipeline_mode<synchronous>, transform_indices = @transform_9, window_bounds = array<i64: 128, 128>}, {pipeline_mode = #tpu.pipeline_mode<synchronous>, transform_indices = @transform_10, window_bounds = array<i64: 1, 128>}, {transform_indices = @transform_11, window_bounds = array<i64: 16, 128>}]} {
    %c0 = arith.constant 0 : index
    %c0_0 = arith.constant 0 : index
    %0 = vector.load %arg1[%c0, %c0_0] : memref<16x32xf32, #tpu.memory_space<vmem>>, vector<16x32xf32>
    %1 = arith.truncf %0 : vector<16x32xf32> to vector<16x32xbf16>
    %c0_1 = arith.constant 0 : index
    %c0_2 = arith.constant 0 : index
    %2 = vector.load %arg2[%c0_1, %c0_2] : memref<32x128xbf16, #tpu.memory_space<vmem>>, vector<32x128xbf16>
    %cst = arith.constant dense<0.000000e+00> : vector<16x128xf32>
    %3 = tpu.matmul %1, %2, %cst {dimension_numbers = #tpu.dot_dimension_numbers<[1], [0], [0], [1], [0, 0, 1, 1], [], []>} : vector<16x32xbf16>, vector<32x128xbf16>, vector<16x128xf32> -> vector<16x128xf32>
    %c0_3 = arith.constant 0 : index
    %c0_4 = arith.constant 0 : index
    %4 = vector.load %arg3[%c0_3, %c0_4] : memref<1x128xf32, #tpu.memory_space<vmem>>, vector<1x128xf32>
    %5 = vector.broadcast %4 : vector<1x128xf32> to vector<16x128xf32>
    %6 = arith.addf %3, %5 : vector<16x128xf32>
    %cst_5 = arith.constant 0.000000e+00 : f32
    %7 = vector.broadcast %cst_5 : f32 to vector<16x128xf32>
    %8 = arith.maximumf %6, %7 : vector<16x128xf32>
    %9 = arith.truncf %8 : vector<16x128xf32> to vector<16x128xbf16>
    %c0_6 = arith.constant 0 : index
    %c0_7 = arith.constant 0 : index
    %10 = vector.load %arg4[%c0_6, %c0_7] : memref<128x128xbf16, #tpu.memory_space<vmem>>, vector<128x128xbf16>
    %cst_8 = arith.constant dense<0.000000e+00> : vector<16x128xf32>
    %11 = tpu.matmul %9, %10, %cst_8 {dimension_numbers = #tpu.dot_dimension_numbers<[1], [0], [0], [1], [0, 0, 1, 1], [], []>} : vector<16x128xbf16>, vector<128x128xbf16>, vector<16x128xf32> -> vector<16x128xf32>
    %c0_9 = arith.constant 0 : index
    %c0_10 = arith.constant 0 : index
    %12 = vector.load %arg5[%c0_9, %c0_10] : memref<1x128xf32, #tpu.memory_space<vmem>>, vector<1x128xf32>
    %13 = vector.broadcast %12 : vector<1x128xf32> to vector<16x128xf32>
    %14 = arith.addf %11, %13 : vector<16x128xf32>
    %cst_11 = arith.constant 0.000000e+00 : f32
    %15 = vector.broadcast %cst_11 : f32 to vector<16x128xf32>
    %16 = arith.maximumf %14, %15 : vector<16x128xf32>
    %17 = arith.truncf %16 : vector<16x128xf32> to vector<16x128xbf16>
    %c0_12 = arith.constant 0 : index
    %c0_13 = arith.constant 0 : index
    %18 = vector.load %arg6[%c0_12, %c0_13] : memref<128x128xbf16, #tpu.memory_space<vmem>>, vector<128x128xbf16>
    %cst_14 = arith.constant dense<0.000000e+00> : vector<16x128xf32>
    %19 = tpu.matmul %17, %18, %cst_14 {dimension_numbers = #tpu.dot_dimension_numbers<[1], [0], [0], [1], [0, 0, 1, 1], [], []>} : vector<16x128xbf16>, vector<128x128xbf16>, vector<16x128xf32> -> vector<16x128xf32>
    %c0_15 = arith.constant 0 : index
    %c0_16 = arith.constant 0 : index
    %20 = vector.load %arg7[%c0_15, %c0_16] : memref<1x128xf32, #tpu.memory_space<vmem>>, vector<1x128xf32>
    %21 = vector.broadcast %20 : vector<1x128xf32> to vector<16x128xf32>
    %22 = arith.addf %19, %21 : vector<16x128xf32>
    %cst_17 = arith.constant 0.000000e+00 : f32
    %23 = vector.broadcast %cst_17 : f32 to vector<16x128xf32>
    %24 = arith.maximumf %22, %23 : vector<16x128xf32>
    %25 = arith.truncf %24 : vector<16x128xf32> to vector<16x128xbf16>
    %c0_18 = arith.constant 0 : index
    %c0_19 = arith.constant 0 : index
    %26 = vector.load %arg8[%c0_18, %c0_19] : memref<128x128xbf16, #tpu.memory_space<vmem>>, vector<128x128xbf16>
    %cst_20 = arith.constant dense<0.000000e+00> : vector<16x128xf32>
    %27 = tpu.matmul %25, %26, %cst_20 {dimension_numbers = #tpu.dot_dimension_numbers<[1], [0], [0], [1], [0, 0, 1, 1], [], []>} : vector<16x128xbf16>, vector<128x128xbf16>, vector<16x128xf32> -> vector<16x128xf32>
    %c0_21 = arith.constant 0 : index
    %c0_22 = arith.constant 0 : index
    %28 = vector.load %arg9[%c0_21, %c0_22] : memref<1x128xf32, #tpu.memory_space<vmem>>, vector<1x128xf32>
    %29 = vector.broadcast %28 : vector<1x128xf32> to vector<16x128xf32>
    %30 = arith.addf %27, %29 : vector<16x128xf32>
    %cst_23 = arith.constant 0.000000e+00 : f32
    %31 = vector.broadcast %cst_23 : f32 to vector<16x128xf32>
    %32 = arith.maximumf %30, %31 : vector<16x128xf32>
    %33 = arith.truncf %32 : vector<16x128xf32> to vector<16x128xbf16>
    %c0_24 = arith.constant 0 : index
    %c0_25 = arith.constant 0 : index
    %34 = vector.load %arg10[%c0_24, %c0_25] : memref<128x128xbf16, #tpu.memory_space<vmem>>, vector<128x128xbf16>
    %cst_26 = arith.constant dense<0.000000e+00> : vector<16x128xf32>
    %35 = tpu.matmul %33, %34, %cst_26 {dimension_numbers = #tpu.dot_dimension_numbers<[1], [0], [0], [1], [0, 0, 1, 1], [], []>} : vector<16x128xbf16>, vector<128x128xbf16>, vector<16x128xf32> -> vector<16x128xf32>
    %c0_27 = arith.constant 0 : index
    %c0_28 = arith.constant 0 : index
    %36 = vector.load %arg11[%c0_27, %c0_28] : memref<1x128xf32, #tpu.memory_space<vmem>>, vector<1x128xf32>
    %37 = vector.broadcast %36 : vector<1x128xf32> to vector<16x128xf32>
    %38 = arith.addf %35, %37 : vector<16x128xf32>
    %c0_29 = arith.constant 0 : index
    %c0_30 = arith.constant 0 : index
    %39 = vector.load %arg12[%c0_29, %c0_30] : memref<16x128xf32, #tpu.memory_space<vmem>>, vector<16x128xf32>
    tpu.vector_store %arg12[%c0_29, %c0_30], %38 {strides = array<i32>} : memref<16x128xf32, #tpu.memory_space<vmem>>, vector<16x128xf32>,
    return
  }
  func.func @transform_0(%arg0: i32) -> (i32, i32) {
    %c0_i32 = arith.constant 0 : i32
    %c0_i32_0 = arith.constant 0 : i32
    return %arg0, %c0_i32 : i32, i32
  }
  func.func @transform_1(%arg0: i32) -> (i32, i32) {
    %c0_i32 = arith.constant 0 : i32
    %c0_i32_0 = arith.constant 0 : i32
    %c0_i32_1 = arith.constant 0 : i32
    return %c0_i32, %c0_i32_0 : i32, i32
  }
  func.func @transform_2(%arg0: i32) -> (i32, i32) {
    %c0_i32 = arith.constant 0 : i32
    %c0_i32_0 = arith.constant 0 : i32
    %c0_i32_1 = arith.constant 0 : i32
    return %c0_i32, %c0_i32_0 : i32, i32
  }
  func.func @transform_3(%arg0: i32) -> (i32, i32) {
    %c0_i32 = arith.constant 0 : i32
    %c0_i32_0 = arith.constant 0 : i32
    %c0_i32_1 = arith.constant 0 : i32
    return %c0_i32, %c0_i32_0 : i32, i32
  }
  func.func @transform_4(%arg0: i32) -> (i32, i32) {
    %c0_i32 = arith.constant 0 : i32
    %c0_i32_0 = arith.constant 0 : i32
    %c0_i32_1 = arith.constant 0 : i32
    return %c0_i32, %c0_i32_0 : i32, i32
  }
  func.func @transform_5(%arg0: i32) -> (i32, i32) {
    %c0_i32 = arith.constant 0 : i32
    %c0_i32_0 = arith.constant 0 : i32
    %c0_i32_1 = arith.constant 0 : i32
    return %c0_i32, %c0_i32_0 : i32, i32
  }
  func.func @transform_6(%arg0: i32) -> (i32, i32) {
    %c0_i32 = arith.constant 0 : i32
    %c0_i32_0 = arith.constant 0 : i32
    %c0_i32_1 = arith.constant 0 : i32
    return %c0_i32, %c0_i32_0 : i32, i32
  }
  func.func @transform_7(%arg0: i32) -> (i32, i32) {
    %c0_i32 = arith.constant 0 : i32
    %c0_i32_0 = arith.constant 0 : i32
    %c0_i32_1 = arith.constant 0 : i32
    return %c0_i32, %c0_i32_0 : i32, i32
  }
  func.func @transform_8(%arg0: i32) -> (i32, i32) {
    %c0_i32 = arith.constant 0 : i32
    %c0_i32_0 = arith.constant 0 : i32
    %c0_i32_1 = arith.constant 0 : i32
    return %c0_i32, %c0_i32_0 : i32, i32
  }
  func.func @transform_9(%arg0: i32) -> (i32, i32) {
    %c0_i32 = arith.constant 0 : i32
    %c0_i32_0 = arith.constant 0 : i32
    %c0_i32_1 = arith.constant 0 : i32
    return %c0_i32, %c0_i32_0 : i32, i32
  }
  func.func @transform_10(%arg0: i32) -> (i32, i32) {
    %c0_i32 = arith.constant 0 : i32
    %c0_i32_0 = arith.constant 0 : i32
    %c0_i32_1 = arith.constant 0 : i32
    return %c0_i32, %c0_i32_0 : i32, i32
  }
  func.func @transform_11(%arg0: i32) -> (i32, i32) {
    %c0_i32 = arith.constant 0 : i32
    %c0_i32_0 = arith.constant 0 : i32
    return %arg0, %c0_i32 : i32, i32
  }
}

module attributes {stable_mosaic.version = 11 : i64} {
  func.func @_mlp_kernel(%arg0: i32, %arg1: memref<16x32xf32, #tpu.memory_space<vmem>>, %arg2: memref<32x128xbf16, #tpu.memory_space<vmem>>, %arg3: memref<1x128xf32, #tpu.memory_space<vmem>>, %arg4: memref<128x128xbf16, #tpu.memory_space<vmem>>, %arg5: memref<1x128xf32, #tpu.memory_space<vmem>>, %arg6: memref<128x128xbf16, #tpu.memory_space<vmem>>, %arg7: memref<1x128xf32, #tpu.memory_space<vmem>>, %arg8: memref<128x128xbf16, #tpu.memory_space<vmem>>, %arg9: memref<1x128xf32, #tpu.memory_space<vmem>>, %arg10: memref<128x128xbf16, #tpu.memory_space<vmem>>, %arg11: memref<1x128xf32, #tpu.memory_space<vmem>>, %arg12: memref<16x128xf32, #tpu.memory_space<vmem>>) attributes {dimension_semantics = [#tpu.dimension_semantics<parallel>], iteration_bounds = array<i64: 1>, scalar_prefetch = 0 : i64, scratch_operands = 0 : i64, tpu.core_type = #tpu.core_type<tc>, window_params = [{transform_indices = @transform_0, window_bounds = array<i64: 16, 32>}, {pipeline_mode = #tpu.pipeline_mode<synchronous>, transform_indices = @transform_1, window_bounds = array<i64: 32, 128>}, {pipeline_mode = #tpu.pipeline_mode<synchronous>, transform_indices = @transform_2, window_bounds = array<i64: 1, 128>}, {pipeline_mode = #tpu.pipeline_mode<synchronous>, transform_indices = @transform_3, window_bounds = array<i64: 128, 128>}, {pipeline_mode = #tpu.pipeline_mode<synchronous>, transform_indices = @transform_4, window_bounds = array<i64: 1, 128>}, {pipeline_mode = #tpu.pipeline_mode<synchronous>, transform_indices = @transform_5, window_bounds = array<i64: 128, 128>}, {pipeline_mode = #tpu.pipeline_mode<synchronous>, transform_indices = @transform_6, window_bounds = array<i64: 1, 128>}, {pipeline_mode = #tpu.pipeline_mode<synchronous>, transform_indices = @transform_7, window_bounds = array<i64: 128, 128>}, {pipeline_mode = #tpu.pipeline_mode<synchronous>, transform_indices = @transform_8, window_bounds = array<i64: 1, 128>}, {pipeline_mode = #tpu.pipeline_mode<synchronous>, transform_indices = @transform_9, window_bounds = array<i64: 128, 128>}, {pipeline_mode = #tpu.pipeline_mode<synchronous>, transform_indices = @transform_10, window_bounds = array<i64: 1, 128>}, {transform_indices = @transform_11, window_bounds = array<i64: 16, 128>}]} {
    %c0 = arith.constant 0 : index
    %c0_0 = arith.constant 0 : index
    %0 = vector.load %arg1[%c0, %c0_0] : memref<16x32xf32, #tpu.memory_space<vmem>>, vector<16x32xf32>
    %1 = arith.truncf %0 : vector<16x32xf32> to vector<16x32xbf16>
    %c0_1 = arith.constant 0 : index
    %c0_2 = arith.constant 0 : index
    %2 = vector.load %arg2[%c0_1, %c0_2] : memref<32x128xbf16, #tpu.memory_space<vmem>>, vector<32x128xbf16>
    %cst = arith.constant dense<0.000000e+00> : vector<16x128xf32>
    %3 = tpu.matmul %1, %2, %cst {dimension_numbers = #tpu.dot_dimension_numbers<[1], [0], [0], [1], [0, 0, 1, 1], [], []>} : vector<16x32xbf16>, vector<32x128xbf16>, vector<16x128xf32> -> vector<16x128xf32>
    %c0_3 = arith.constant 0 : index
    %c0_4 = arith.constant 0 : index
    %4 = vector.load %arg3[%c0_3, %c0_4] : memref<1x128xf32, #tpu.memory_space<vmem>>, vector<1x128xf32>
    %5 = vector.broadcast %4 : vector<1x128xf32> to vector<16x128xf32>
    %6 = arith.addf %3, %5 : vector<16x128xf32>
    %cst_5 = arith.constant 0.000000e+00 : f32
    %7 = vector.broadcast %cst_5 : f32 to vector<16x128xf32>
    %8 = arith.maximumf %6, %7 : vector<16x128xf32>
    %9 = arith.truncf %8 : vector<16x128xf32> to vector<16x128xbf16>
    %c0_6 = arith.constant 0 : index
    %c0_7 = arith.constant 0 : index
    %10 = vector.load %arg4[%c0_6, %c0_7] : memref<128x128xbf16, #tpu.memory_space<vmem>>, vector<128x128xbf16>
    %cst_8 = arith.constant dense<0.000000e+00> : vector<16x128xf32>
    %11 = tpu.matmul %9, %10, %cst_8 {dimension_numbers = #tpu.dot_dimension_numbers<[1], [0], [0], [1], [0, 0, 1, 1], [], []>} : vector<16x128xbf16>, vector<128x128xbf16>, vector<16x128xf32> -> vector<16x128xf32>
    %c0_9 = arith.constant 0 : index
    %c0_10 = arith.constant 0 : index
    %12 = vector.load %arg5[%c0_9, %c0_10] : memref<1x128xf32, #tpu.memory_space<vmem>>, vector<1x128xf32>
    %13 = vector.broadcast %12 : vector<1x128xf32> to vector<16x128xf32>
    %14 = arith.addf %11, %13 : vector<16x128xf32>
    %cst_11 = arith.constant 0.000000e+00 : f32
    %15 = vector.broadcast %cst_11 : f32 to vector<16x128xf32>
    %16 = arith.maximumf %14, %15 : vector<16x128xf32>
    %17 = arith.truncf %16 : vector<16x128xf32> to vector<16x128xbf16>
    %c0_12 = arith.constant 0 : index
    %c0_13 = arith.constant 0 : index
    %18 = vector.load %arg6[%c0_12, %c0_13] : memref<128x128xbf16, #tpu.memory_space<vmem>>, vector<128x128xbf16>
    %cst_14 = arith.constant dense<0.000000e+00> : vector<16x128xf32>
    %19 = tpu.matmul %17, %18, %cst_14 {dimension_numbers = #tpu.dot_dimension_numbers<[1], [0], [0], [1], [0, 0, 1, 1], [], []>} : vector<16x128xbf16>, vector<128x128xbf16>, vector<16x128xf32> -> vector<16x128xf32>
    %c0_15 = arith.constant 0 : index
    %c0_16 = arith.constant 0 : index
    %20 = vector.load %arg7[%c0_15, %c0_16] : memref<1x128xf32, #tpu.memory_space<vmem>>, vector<1x128xf32>
    %21 = vector.broadcast %20 : vector<1x128xf32> to vector<16x128xf32>
    %22 = arith.addf %19, %21 : vector<16x128xf32>
    %cst_17 = arith.constant 0.000000e+00 : f32
    %23 = vector.broadcast %cst_17 : f32 to vector<16x128xf32>
    %24 = arith.maximumf %22, %23 : vector<16x128xf32>
    %25 = arith.truncf %24 : vector<16x128xf32> to vector<16x128xbf16>
    %c0_18 = arith.constant 0 : index
    %c0_19 = arith.constant 0 : index
    %26 = vector.load %arg8[%c0_18, %c0_19] : memref<128x128xbf16, #tpu.memory_space<vmem>>, vector<128x128xbf16>
    %cst_20 = arith.constant dense<0.000000e+00> : vector<16x128xf32>
    %27 = tpu.matmul %25, %26, %cst_20 {dimension_numbers = #tpu.dot_dimension_numbers<[1], [0], [0], [1], [0, 0, 1, 1], [], []>} : vector<16x128xbf16>, vector<128x128xbf16>, vector<16x128xf32> -> vector<16x128xf32>
    %c0_21 = arith.constant 0 : index
    %c0_22 = arith.constant 0 : index
    %28 = vector.load %arg9[%c0_21, %c0_22] : memref<1x128xf32, #tpu.memory_space<vmem>>, vector<1x128xf32>
    %29 = vector.broadcast %28 : vector<1x128xf32> to vector<16x128xf32>
    %30 = arith.addf %27, %29 : vector<16x128xf32>
    %cst_23 = arith.constant 0.000000e+00 : f32
    %31 = vector.broadcast %cst_23 : f32 to vector<16x128xf32>
    %32 = arith.maximumf %30, %31 : vector<16x128xf32>
    %33 = arith.truncf %32 : vector<16x128xf32> to vector<16x128xbf16>
    %c0_24 = arith.constant 0 : index
    %c0_25 = arith.constant 0 : index
    %34 = vector.load %arg10[%c0_24, %c0_25] : memref<128x128xbf16, #tpu.memory_space<vmem>>, vector<128x128xbf16>
    %cst_26 = arith.constant dense<0.000000e+00> : vector<16x128xf32>
    %35 = tpu.matmul %33, %34, %cst_26 {dimension_numbers = #tpu.dot_dimension_numbers<[1], [0], [0], [1], [0, 0, 1, 1], [], []>} : vector<16x128xbf16>, vector<128x128xbf16>, vector<16x128xf32> -> vector<16x128xf32>
    %c0_27 = arith.constant 0 : index
    %c0_28 = arith.constant 0 : index
    %36 = vector.load %arg11[%c0_27, %c0_28] : memref<1x128xf32, #tpu.memory_space<vmem>>, vector<1x128xf32>
    %37 = vector.broadcast %36 : vector<1x128xf32> to vector<16x128xf32>
    %38 = arith.addf %35, %37 : vector<16x128xf32>
    %c0_29 = arith.constant 0 : index
    %c0_30 = arith.constant 0 : index
    %39 = vector.load %arg12[%c0_29, %c0_30] : memref<16x128xf32, #tpu.memory_space<vmem>>, vector<16x128xf32>
    tpu.vector_store %arg12[%c0_29, %c0_30], %38 {strides = array<i32>} : memref<16x128xf32, #tpu.memory_space<vmem>>, vector<16x128xf32>,
    return
  }
  func.func @transform_0(%arg0: i32) -> (i32, i32) {
    %c0_i32 = arith.constant 0 : i32
    %c0_i32_0 = arith.constant 0 : i32
    return %arg0, %c0_i32 : i32, i32
  }
  func.func @transform_1(%arg0: i32) -> (i32, i32) {
    %c0_i32 = arith.constant 0 : i32
    %c0_i32_0 = arith.constant 0 : i32
    %c0_i32_1 = arith.constant 0 : i32
    return %c0_i32, %c0_i32_0 : i32, i32
  }
  func.func @transform_2(%arg0: i32) -> (i32, i32) {
    %c0_i32 = arith.constant 0 : i32
    %c0_i32_0 = arith.constant 0 : i32
    %c0_i32_1 = arith.constant 0 : i32
    return %c0_i32, %c0_i32_0 : i32, i32
  }
  func.func @transform_3(%arg0: i32) -> (i32, i32) {
    %c0_i32 = arith.constant 0 : i32
    %c0_i32_0 = arith.constant 0 : i32
    %c0_i32_1 = arith.constant 0 : i32
    return %c0_i32, %c0_i32_0 : i32, i32
  }
  func.func @transform_4(%arg0: i32) -> (i32, i32) {
    %c0_i32 = arith.constant 0 : i32
    %c0_i32_0 = arith.constant 0 : i32
    %c0_i32_1 = arith.constant 0 : i32
    return %c0_i32, %c0_i32_0 : i32, i32
  }
  func.func @transform_5(%arg0: i32) -> (i32, i32) {
    %c0_i32 = arith.constant 0 : i32
    %c0_i32_0 = arith.constant 0 : i32
    %c0_i32_1 = arith.constant 0 : i32
    return %c0_i32, %c0_i32_0 : i32, i32
  }
  func.func @transform_6(%arg0: i32) -> (i32, i32) {
    %c0_i32 = arith.constant 0 : i32
    %c0_i32_0 = arith.constant 0 : i32
    %c0_i32_1 = arith.constant 0 : i32
    return %c0_i32, %c0_i32_0 : i32, i32
  }
  func.func @transform_7(%arg0: i32) -> (i32, i32) {
    %c0_i32 = arith.constant 0 : i32
    %c0_i32_0 = arith.constant 0 : i32
    %c0_i32_1 = arith.constant 0 : i32
    return %c0_i32, %c0_i32_0 : i32, i32
  }
  func.func @transform_8(%arg0: i32) -> (i32, i32) {
    %c0_i32 = arith.constant 0 : i32
    %c0_i32_0 = arith.constant 0 : i32
    %c0_i32_1 = arith.constant 0 : i32
    return %c0_i32, %c0_i32_0 : i32, i32
  }
  func.func @transform_9(%arg0: i32) -> (i32, i32) {
    %c0_i32 = arith.constant 0 : i32
    %c0_i32_0 = arith.constant 0 : i32
    %c0_i32_1 = arith.constant 0 : i32
    return %c0_i32, %c0_i32_0 : i32, i32
  }
  func.func @transform_10(%arg0: i32) -> (i32, i32) {
    %c0_i32 = arith.constant 0 : i32
    %c0_i32_0 = arith.constant 0 : i32
    %c0_i32_1 = arith.constant 0 : i32
    return %c0_i32, %c0_i32_0 : i32, i32
  }
  func.func @transform_11(%arg0: i32) -> (i32, i32) {
    %c0_i32 = arith.constant 0 : i32
    %c0_i32_0 = arith.constant 0 : i32
    return %arg0, %c0_i32 : i32, i32
  }
}

</mosaic_0001>

<bundles_post_ra>
// kernel: _mlp_forward_jit.1
= control target key start
LH: loop header
LB: loop body
LE: loop exit
PB: predicated region body
PF: predicated region fallthrough
CT: control target
= control target key end

     0   :  { %16 = vsyncpa [#allocation3], 0  ;;  %s1173_s0 = inlined_call_operand.hbm [shape: f32[16,32], index: 0, kind: input, shape index: {}]   ;;  %s1174_s1 = inlined_call_operand.hbm [shape: bf16[32,128], index: 1, kind: input, shape index: {}]   ;;  %s1175_s2 = inlined_call_operand.vmem [shape: f32[1,128], index: 2, kind: input, shape index: {}]   ;;  %s1176_s3 = inlined_call_operand.hbm [shape: bf16[128,128], index: 3, kind: input, shape index: {}]   ;;  %s1177_s4 = inlined_call_operand.vmem [shape: f32[1,128], index: 4, kind: input, shape index: {}]   ;;  %s1178_s5 = inlined_call_operand.hbm [shape: bf16[128,128], index: 5, kind: input, shape index: {}]   ;;  %s1179_s6 = inlined_call_operand.vmem [shape: f32[1,128], index: 6, kind: input, shape index: {}]   ;;  %s1180_s7 = inlined_call_operand.hbm [shape: bf16[128,128], index: 7, kind: input, shape index: {}]   ;;  %s1181_s8 = inlined_call_operand.vmem [shape: f32[1,128], index: 8, kind: input, shape index: {}]   ;;  %s1182_s9 = inlined_call_operand.hbm [shape: bf16[128,128], index: 9, kind: input, shape index: {}]   ;;  %s1183_s10 = inlined_call_operand.vmem [shape: f32[1,128], index: 10, kind: input, shape index: {}]   ;;  %s1184_s11 = inlined_call_operand.vmem [shape: f32[16,128], index: 11, kind: output, shape index: {}]  }
   0x1   :  { %17 = vsyncpa [#allocation5], 0 }
   0x2   :  { %18 = vsyncpa [#allocation8], 0 }
   0x3   :  { %19 = vsyncpa [#allocation11], 0  ;;  %s1003_s17 = smov [#allocation4]  }
   0x4   :  { %s37_s18 = sshll.u32 %s1003_s17, 4  ;;  %s38_s18 = int_to_ptr.vmem [resolvable:$true] %s37_s18 }
   0x5   :  { %s883_s19 = scalar_lea.vmem %s38_s18, 256  ;;  %p888_p1 = scmp.lt.s32.totalorder %s38_s18, %s38_s18 }
   0x6   :  { %p884_p0 = scmp.ne.s32.totalorder %s38_s18, %s883_s19  ;;  %p889_p2 = scmp.lt.s32.totalorder %s883_s19, %s883_s19 }
   0x8   :  { %p890_p3 = por %p889_p2, %p888_p1 }
   0xa   :  { %p891_p4 = pnand %p890_p3, %p884_p0 }
   0xc   :  { %894 = shalt.err (!%p891_p4)
}
   0xd   :  { %s1004_s20 = smov 64   ;;  %s1005_s21 = smov 4  }
   0xe   :  { %43 = dma.hbm_to_vmem [thread:$0]  %s1174_s1, 256, %s38_s18, [#allocation5], %s1004_s20, %s1004_s20, %s1005_s21  }
   0xf   :  { %s1006_s24 = smov [#allocation7]   ;;  %s1007_s26 = smov [#allocation2]  }
  0x10   :  { %s65_s25 = sshll.u32 %s1006_s24, 4  ;;  %s25_s27 = sshll.u32 %s1007_s26, 4  ;;  %s66_s25 = int_to_ptr.vmem [resolvable:$true] %s65_s25  ;;  %s26_s27 = int_to_ptr.vmem [resolvable:$true] %s25_s27 }
  0x11   :  { %s903_s28 = scalar_lea.vmem %s66_s25, 1024  ;;  %p908_p6 = scmp.lt.s32.totalorder %s66_s25, %s66_s25 }
  0x12   :  { %p904_p5 = scmp.ne.s32.totalorder %s66_s25, %s903_s28  ;;  %p909_p7 = scmp.lt.s32.totalorder %s903_s28, %s903_s28 }
  0x14   :  { %p910_p8 = por %p909_p7, %p908_p6 }
  0x16   :  { %p911_p9 = pnand %p910_p8, %p904_p5 }
  0x18   :  { %914 = shalt.err (!%p911_p9)
}
  0x19   :  { %71 = dma.hbm_to_vmem [thread:$0]  %s1178_s5, 1024, %s66_s25, [#allocation8], %s1004_s20, %s1004_s20, %s1005_s21  }
  0x1a   :  { %s923_s1 = scalar_lea.vmem %s26_s27, 256  ;;  %p928_p11 = scmp.lt.s32.totalorder %s26_s27, %s26_s27 }
  0x1b   :  { %p924_p10 = scmp.ne.s32.totalorder %s26_s27, %s923_s1  ;;  %p929_p12 = scmp.lt.s32.totalorder %s923_s1, %s923_s1 }
  0x1d   :  { %p930_p13 = por %p929_p12, %p928_p11 }
  0x1f   :  { %p931_p0 = pnand %p930_p13, %p924_p10 }
  0x21   :  { %934 = shalt.err (!%p931_p0)
}
  0x22   :  { %s1008_s12 = smov 128   ;;  %s1009_s13 = smov 8  }
  0x23   :  { %31 = dma.hbm_to_vmem [thread:$0]  %s1173_s0, 256, %s26_s27, [#allocation3], %s1008_s12, %s1008_s12, %s1009_s13  }
  0x24   :  { %s1010_s16 = smov [#allocation6]   ;;  %s1011_s18 = smov [#allocation9]  }
  0x25   :  { %s51_s17 = sshll.u32 %s1010_s16, 4  ;;  %s79_s19 = sshll.u32 %s1011_s18, 4  ;;  %s52_s17 = int_to_ptr.vmem [resolvable:$true] %s51_s17  ;;  %s80_s19 = int_to_ptr.vmem [resolvable:$true] %s79_s19 }
  0x26   :  { %s943_s5 = scalar_lea.vmem %s52_s17, 1024  ;;  %p948_p2 = scmp.lt.s32.totalorder %s52_s17, %s52_s17 }
  0x27   :  { %p944_p1 = scmp.ne.s32.totalorder %s52_s17, %s943_s5  ;;  %p949_p3 = scmp.lt.s32.totalorder %s943_s5, %s943_s5 }
  0x29   :  { %p950_p4 = por %p949_p3, %p948_p2 }
  0x2b   :  { %p951_p5 = pnand %p950_p4, %p944_p1 }
  0x2d   :  { %954 = shalt.err (!%p951_p5)
}
  0x2e   :  { %57 = dma.hbm_to_vmem [thread:$0]  %s1176_s3, 1024, %s52_s17, [#allocation5], %s1004_s20, %s1004_s20, %s1005_s21  }
  0x2f   :  { %s963_s0 = scalar_lea.vmem %s80_s19, 1024  ;;  %p968_p7 = scmp.lt.s32.totalorder %s80_s19, %s80_s19 }
  0x30   :  { %p964_p6 = scmp.ne.s32.totalorder %s80_s19, %s963_s0  ;;  %p969_p8 = scmp.lt.s32.totalorder %s963_s0, %s963_s0 }
  0x32   :  { %p970_p9 = por %p969_p8, %p968_p7 }
  0x34   :  { %p971_p10 = pnand %p970_p9, %p964_p6 }
  0x36   :  { %974 = shalt.err (!%p971_p10)
}
  0x37   :  { %85 = dma.hbm_to_vmem [thread:$0]  %s1180_s7, 1024, %s80_s19, [#allocation8], %s1004_s20, %s1004_s20, %s1005_s21  }
  0x38   :  { %s1012_s26 = smov [#allocation10]  }
  0x39   :  { %s93_s27 = sshll.u32 %s1012_s26, 4  ;;  %s94_s27 = int_to_ptr.vmem [resolvable:$true] %s93_s27 }
  0x3a   :  { %s983_s28 = scalar_lea.vmem %s94_s27, 1024  ;;  %p988_p12 = scmp.lt.s32.totalorder %s94_s27, %s94_s27 }
  0x3b   :  { %p984_p11 = scmp.ne.s32.totalorder %s94_s27, %s983_s28  ;;  %p989_p13 = scmp.lt.s32.totalorder %s983_s28, %s983_s28 }
  0x3d   :  { %p990_p0 = por %p989_p13, %p988_p12 }
  0x3f   :  { %p991_p1 = pnand %p990_p0, %p984_p11 }
  0x41   :  { %994 = shalt.err (!%p991_p1)
}
  0x42   :  { %99 = dma.hbm_to_vmem [thread:$0]  %s1182_s9, 1024, %s94_s27, [#allocation11], %s1004_s20, %s1004_s20, %s1005_s21  }
  0x43   :  { %995 = dma.done.wait [#allocation3], 256  }
  0x44   :  { %996 = vsyncadd [#allocation3], 4294967040 }
  0x45   :  { %997 = dma.done.wait [#allocation5], 1280  }
  0x46   :  { %998 = vsyncadd [#allocation5], 4294966016 }
  0x47   :  { %999 = dma.done.wait [#allocation8], 2048  }
  0x48   :  { %1000 = vsyncadd [#allocation8], 4294965248 }
  0x49   :  { %1001 = dma.done.wait [#allocation11], 1024  }
  0x4a   :  { %1002 = vsyncadd [#allocation11], 4294966272  ;;  %v1013_v0 = vmov 0.0   ;;  %vm1014_vm0 = vmmov 0   ;;  %v841_v1 = vld [vmem:[#allocation4 + $0x8] sm:$0xff]   ;;  %v842_v2 = vld [vmem:[#allocation4] sm:$0xff]  }
  0x4b   :  { %741 = vmatprep.subr.bf16.mxu0 %v1013_v0  ;;  %745 = vmatprep.mubr.msk.bf16.mxu0 %vm1014_vm0, %v1013_v0  ;;  %v121_v3 = vld [vmem:[#allocation2] sm:$0xff]  ;;  %v122_v4 = vld [vmem:[#allocation2 + $0x8] sm:$0xff]  ;;  %v843_v5 = vld [vmem:[#allocation6 + $0x38] sm:$0xff]   ;;  %vm147_vm1 = vcmask 261120  }
  0x4c   :  { %749 = vmatprep.subr.bf16.mxu1 %v1013_v0  ;;  %765 = vmatprep.mubr.msk.bf16.mxu1 %vm1014_vm0, %v1013_v0  ;;  %v123_v6 = vpack.c.bf16 %v122_v4, %v121_v3  ;;  %v844_v7 = vld [vmem:[#allocation6 + $0x30] sm:$0xff]   ;;  %v845_v8 = vld [vmem:[#allocation6 + $0x28] sm:$0xff]   ;;  %v846_v9 = vld [vmem:[#allocation6 + $0x20] sm:$0xff]  }
  0x4d   :  { %742 = vmatpush3.bf16.msra.mxu0 %v841_v1  ;;  %750 = vmatpush3.bf16.msra.mxu1 %v843_v5  ;;  %v847_v10 = vld [vmem:[#allocation6 + $0x18] sm:$0xff]   ;;  %v848_v11 = vld [vmem:[#allocation6 + $0x10] sm:$0xff]   ;;  %v849_v12 = vld [vmem:[#allocation6 + $0x8] sm:$0xff]  }
  0x4e   :  { %743 = vmatprep.subr.bf16.mxu0 %v1013_v0  ;;  %751 = vmatprep.subr.bf16.mxu1 %v1013_v0  ;;  %v850_v13 = vld [vmem:[#allocation6] sm:$0xff]   ;;  %v851_v14 = vld [vmem:[#allocation7 + $0x38] sm:$0xff]   ;;  %v852_v15 = vld [vmem:[#allocation7 + $0x30] sm:$0xff]  }
  0x4f   :  { %v853_v16 = vld [vmem:[#allocation7 + $0x28] sm:$0xff]   ;;  %v854_v17 = vld [vmem:[#allocation7 + $0x20] sm:$0xff]   ;;  %v855_v18 = vld [vmem:[#allocation7 + $0x18] sm:$0xff]  }
  0x50   :  { %v662_v19 = vld [vmem:[%s1175_s2] ss:$0 sm:$0xff]  ;;  %v856_v29 = vld [vmem:[#allocation7 + $0x10] sm:$0xff]   ;;  %v857_v30 = vld [vmem:[#allocation7 + $0x8] sm:$0xff]  }
  0x51   :  { %744 = vmatpush3.bf16.msra.mxu0 %v842_v2  ;;  %752 = vmatpush3.bf16.msra.mxu1 %v844_v7  ;;  %v858_v31 = vld [vmem:[#allocation7] sm:$0xff]   ;;  %v859_v32 = vld [vmem:[#allocation9 + $0x38] sm:$0xff]   ;;  %v860_v33 = vld [vmem:[#allocation9 + $0x30] sm:$0xff]  }
  0x52   :  { %769 = vmatprep.subr.bf16.mxu0 %v1013_v0  ;;  %753 = vmatprep.subr.bf16.mxu1 %v1013_v0  ;;  %v861_v34 = vld [vmem:[#allocation9 + $0x28] sm:$0xff]   ;;  %v862_v35 = vld [vmem:[#allocation9 + $0x20] sm:$0xff]   ;;  %v863_v36 = vld [vmem:[#allocation9 + $0x18] sm:$0xff]  }
  0x53   :  { %v666_v37 = vld [vmem:[%s1177_s4] ss:$0 sm:$0xff]  ;;  %v864_v47 = vld [vmem:[#allocation9 + $0x10] sm:$0xff]   ;;  %v865_v48 = vld [vmem:[#allocation9 + $0x8] sm:$0xff]  }
  0x54   :  { %746 = vmatmul.mubr.msk.bf16.vlgmr.msra.gmra.mxu0 %vm147_vm1, %v123_v6  ;;  %v866_v49 = vld [vmem:[#allocation9] sm:$0xff]   ;;  %v867_v50 = vld [vmem:[#allocation10 + $0x38] sm:$0xff]   ;;  %v868_v51 = vld [vmem:[#allocation10 + $0x30] sm:$0xff]  }
  0x55   :  { %785 = vmatprep.mubr.msk.bf16.mxu0 %vm1014_vm0, %v1013_v0  ;;  %754 = vmatpush3.bf16.msra.mxu1 %v845_v8  ;;  %v869_v52 = vld [vmem:[#allocation10 + $0x28] sm:$0xff]   ;;  %v870_v53 = vld [vmem:[#allocation10 + $0x20] sm:$0xff]   ;;  %v871_v54 = vld [vmem:[#allocation10 + $0x18] sm:$0xff]  }
  0x56   :  { %755 = vmatprep.subr.bf16.mxu1 %v1013_v0  ;;  %770 = vmatpush3.bf16.msra.mxu0 %v851_v14  ;;  %v675_v55 = vld [vmem:[%s1179_s6] ss:$0 sm:$0xff]  ;;  %v872_v2 = vld [vmem:[#allocation10 + $0x10] sm:$0xff]   ;;  %v873_v3 = vld [vmem:[#allocation10 + $0x8] sm:$0xff]  }
  0x57   :  { %771 = vmatprep.subr.bf16.mxu0 %v1013_v0  ;;  %v874_v4 = vld [vmem:[#allocation10] sm:$0xff]  }
  0x58   :  { %v684_v5 = vld [vmem:[%s1181_s8] ss:$0 sm:$0xff] }
  0x59   :  { %756 = vmatpush3.bf16.msra.mxu1 %v846_v9 }
  0x5a   :  { %757 = vmatprep.subr.bf16.mxu1 %v1013_v0  ;;  %772 = vmatpush3.bf16.msra.mxu0 %v852_v15 }
  0x5b   :  { %773 = vmatprep.subr.bf16.mxu0 %v1013_v0 }
  0x5d   :  { %758 = vmatpush3.bf16.msra.mxu1 %v847_v10 }
  0x5e   :  { %759 = vmatprep.subr.bf16.mxu1 %v1013_v0  ;;  %774 = vmatpush3.bf16.msra.mxu0 %v853_v16 }
  0x5f   :  { %775 = vmatprep.subr.bf16.mxu0 %v1013_v0 }
  0x61   :  { %760 = vmatpush3.bf16.msra.mxu1 %v848_v11 }
  0x62   :  { %761 = vmatprep.subr.bf16.mxu1 %v1013_v0  ;;  %776 = vmatpush3.bf16.msra.mxu0 %v854_v17 }
  0x63   :  { %777 = vmatprep.subr.bf16.mxu0 %v1013_v0 }
  0x65   :  { %762 = vmatpush3.bf16.msra.mxu1 %v849_v12 }
  0x66   :  { %763 = vmatprep.subr.bf16.mxu1 %v1013_v0  ;;  %778 = vmatpush3.bf16.msra.mxu0 %v855_v18 }
  0x67   :  { %779 = vmatprep.subr.bf16.mxu0 %v1013_v0 }
  0x69   :  { %764 = vmatpush3.bf16.msra.mxu1 %v850_v13 }
  0x6a   :  { %789 = vmatprep.subr.bf16.mxu1 %v1013_v0  ;;  %780 = vmatpush3.bf16.msra.mxu0 %v856_v29 }
  0x6b   :  { %781 = vmatprep.subr.bf16.mxu0 %v1013_v0 }
  0x6e   :  { %782 = vmatpush3.bf16.msra.mxu0 %v857_v30 }
  0x6f   :  { %783 = vmatprep.subr.bf16.mxu0 %v1013_v0 }
  0x72   :  { %784 = vmatpush3.bf16.msra.mxu0 %v858_v31 }
  0x73   :  { %809 = vmatprep.subr.bf16.mxu0 %v1013_v0 }
 0x114   :  { %v185_v20 = vpop.f32.mrf.mxu0 }
 0x115   :  { %v186_v22 = vadd.f32 %v662_v19, %v185_v20 }
 0x116   :  { %v747_v21 = vpop.f32.mrf.mxu0 }
 0x117   :  { %v192_v26 = vmax.f32 %v186_v22, 0.0 }
 0x118   :  { %v188_v23 = vpop.f32.mrf.mxu0 }
 0x119   :  { %v189_v24 = vadd.f32 %v662_v19, %v188_v23 }
 0x11a   :  { %v748_v25 = vpop.f32.mrf.mxu0 }
 0x11b   :  { %v193_v27 = vmax.f32 %v189_v24, 0.0 }
 0x11d   :  { %v194_v28 = vpack.c.bf16 %v193_v27, %v192_v26 }
 0x11f   :  { %766 = vmatmul.mubr.bf16.vlgmr.msra.gmra.mxu1 %v194_v28 }
 0x120   :  { %805 = vmatprep.mubr.msk.bf16.mxu1 %vm1014_vm0, %v1013_v0  ;;  %790 = vmatpush3.bf16.msra.mxu1 %v859_v32 }
 0x121   :  { %791 = vmatprep.subr.bf16.mxu1 %v1013_v0 }
 0x124   :  { %792 = vmatpush3.bf16.msra.mxu1 %v860_v33 }
 0x125   :  { %793 = vmatprep.subr.bf16.mxu1 %v1013_v0 }
 0x128   :  { %794 = vmatpush3.bf16.msra.mxu1 %v861_v34 }
 0x129   :  { %795 = vmatprep.subr.bf16.mxu1 %v1013_v0 }
 0x12c   :  { %796 = vmatpush3.bf16.msra.mxu1 %v862_v35 }
 0x12d   :  { %797 = vmatprep.subr.bf16.mxu1 %v1013_v0 }
 0x130   :  { %798 = vmatpush3.bf16.msra.mxu1 %v863_v36 }
 0x131   :  { %799 = vmatprep.subr.bf16.mxu1 %v1013_v0 }
 0x134   :  { %800 = vmatpush3.bf16.msra.mxu1 %v864_v47 }
 0x135   :  { %801 = vmatprep.subr.bf16.mxu1 %v1013_v0 }
 0x138   :  { %802 = vmatpush3.bf16.msra.mxu1 %v865_v48 }
 0x139   :  { %803 = vmatprep.subr.bf16.mxu1 %v1013_v0 }
 0x13c   :  { %804 = vmatpush3.bf16.msra.mxu1 %v866_v49 }
 0x1df   :  { %v300_v38 = vpop.f32.mrf.mxu1 }
 0x1e0   :  { %v301_v40 = vadd.f32 %v666_v37, %v300_v38 }
 0x1e1   :  { %v767_v39 = vpop.f32.mrf.mxu1 }
 0x1e2   :  { %v307_v44 = vmax.f32 %v301_v40, 0.0 }
 0x1e3   :  { %v303_v41 = vpop.f32.mrf.mxu1 }
 0x1e4   :  { %v304_v42 = vadd.f32 %v666_v37, %v303_v41 }
 0x1e5   :  { %v768_v43 = vpop.f32.mrf.mxu1 }
 0x1e6   :  { %v308_v45 = vmax.f32 %v304_v42, 0.0 }
 0x1e8   :  { %v309_v46 = vpack.c.bf16 %v308_v45, %v307_v44 }
 0x1ea   :  { %786 = vmatmul.mubr.bf16.vlgmr.msra.gmra.mxu0 %v309_v46 }
 0x1eb   :  { %825 = vmatprep.mubr.msk.bf16.mxu0 %vm1014_vm0, %v1013_v0  ;;  %810 = vmatpush3.bf16.msra.mxu0 %v867_v50 }
 0x1ec   :  { %811 = vmatprep.subr.bf16.mxu0 %v1013_v0 }
 0x1ef   :  { %812 = vmatpush3.bf16.msra.mxu0 %v868_v51 }
 0x1f0   :  { %813 = vmatprep.subr.bf16.mxu0 %v1013_v0 }
 0x1f3   :  { %814 = vmatpush3.bf16.msra.mxu0 %v869_v52 }
 0x1f4   :  { %815 = vmatprep.subr.bf16.mxu0 %v1013_v0 }
 0x1f7   :  { %816 = vmatpush3.bf16.msra.mxu0 %v870_v53 }
 0x1f8   :  { %817 = vmatprep.subr.bf16.mxu0 %v1013_v0 }
 0x1fb   :  { %818 = vmatpush3.bf16.msra.mxu0 %v871_v54 }
 0x1fc   :  { %819 = vmatprep.subr.bf16.mxu0 %v1013_v0 }
 0x1ff   :  { %820 = vmatpush3.bf16.msra.mxu0 %v872_v2 }
 0x200   :  { %821 = vmatprep.subr.bf16.mxu0 %v1013_v0 }
 0x203   :  { %822 = vmatpush3.bf16.msra.mxu0 %v873_v3 }
 0x204   :  { %823 = vmatprep.subr.bf16.mxu0 %v1013_v0  ;;  %v693_v0 = vld [vmem:[%s1183_s10] ss:$0 sm:$0xff] }
 0x207   :  { %824 = vmatpush3.bf16.msra.mxu0 %v874_v4 }
 0x2aa   :  { %v415_v56 = vpop.f32.mrf.mxu0 }
 0x2ab   :  { %v416_v58 = vadd.f32 %v675_v55, %v415_v56 }
 0x2ac   :  { %v787_v57 = vpop.f32.mrf.mxu0 }
 0x2ad   :  { %v422_v62 = vmax.f32 %v416_v58, 0.0 }
 0x2ae   :  { %v418_v59 = vpop.f32.mrf.mxu0 }
 0x2af   :  { %v419_v60 = vadd.f32 %v675_v55, %v418_v59 }
 0x2b0   :  { %v788_v61 = vpop.f32.mrf.mxu0 }
 0x2b1   :  { %v423_v63 = vmax.f32 %v419_v60, 0.0 }
 0x2b3   :  { %v424_v1 = vpack.c.bf16 %v423_v63, %v422_v62 }
 0x2b5   :  { %806 = vmatmul.mubr.bf16.vlgmr.msra.gmra.mxu1 %v424_v1 }
 0x375   :  { %v530_v6 = vpop.f32.mrf.mxu1 }
 0x376   :  { %v531_v8 = vadd.f32 %v684_v5, %v530_v6 }
 0x377   :  { %v807_v7 = vpop.f32.mrf.mxu1 }
 0x378   :  { %v537_v12 = vmax.f32 %v531_v8, 0.0 }
 0x379   :  { %v533_v9 = vpop.f32.mrf.mxu1 }
 0x37a   :  { %v534_v10 = vadd.f32 %v684_v5, %v533_v9 }
 0x37b   :  { %v808_v11 = vpop.f32.mrf.mxu1 }
 0x37c   :  { %v538_v13 = vmax.f32 %v534_v10, 0.0 }
 0x37e   :  { %v539_v14 = vpack.c.bf16 %v538_v13, %v537_v12 }
 0x380   :  { %826 = vmatmul.mubr.bf16.vlgmr.msra.gmra.mxu0 %v539_v14 }
 0x440   :  { %v645_v15 = vpop.f32.mrf.mxu0 }
 0x441   :  { %v646_v16 = vadd.f32 %v693_v0, %v645_v15 }
 0x442   :  { %v827_v17 = vpop.f32.mrf.mxu0 }
 0x443   :  { %652 = vst [vmem:[%s1184_s11] sm:$0xff] %v646_v16 }
 0x444   :  { %v648_v18 = vpop.f32.mrf.mxu0 }
 0x445   :  { %v649_v19 = vadd.f32 %v693_v0, %v648_v18 }
 0x446   :  { %v828_v20 = vpop.f32.mrf.mxu0 }
 0x447   :  { %653 = vst [vmem:[%s1184_s11 + $0x8] sm:$0xff] %v649_v19 }
 0x448   :  { %658 = vsyncpa [#allocation3], 1 }
 0x449   :  { %659 = vsyncpa [#allocation5], 1 }
 0x44a   :  { %660 = vsyncpa [#allocation8], 1 }
 0x44b   :  { %661 = vsyncpa [#allocation11], 1 }

// kernel: _mlp_forward_jit.1
= control target key start
LH: loop header
LB: loop body
LE: loop exit
PB: predicated region body
PF: predicated region fallthrough
CT: control target
= control target key end

     0   :  { %16 = vsyncpa [#allocation3], 0  ;;  %s1173_s0 = inlined_call_operand.hbm [shape: f32[16,32], index: 0, kind: input, shape index: {}]   ;;  %s1174_s1 = inlined_call_operand.hbm [shape: bf16[32,128], index: 1, kind: input, shape index: {}]   ;;  %s1175_s2 = inlined_call_operand.vmem [shape: f32[1,128], index: 2, kind: input, shape index: {}]   ;;  %s1176_s3 = inlined_call_operand.hbm [shape: bf16[128,128], index: 3, kind: input, shape index: {}]   ;;  %s1177_s4 = inlined_call_operand.vmem [shape: f32[1,128], index: 4, kind: input, shape index: {}]   ;;  %s1178_s5 = inlined_call_operand.hbm [shape: bf16[128,128], index: 5, kind: input, shape index: {}]   ;;  %s1179_s6 = inlined_call_operand.vmem [shape: f32[1,128], index: 6, kind: input, shape index: {}]   ;;  %s1180_s7 = inlined_call_operand.hbm [shape: bf16[128,128], index: 7, kind: input, shape index: {}]   ;;  %s1181_s8 = inlined_call_operand.vmem [shape: f32[1,128], index: 8, kind: input, shape index: {}]   ;;  %s1182_s9 = inlined_call_operand.hbm [shape: bf16[128,128], index: 9, kind: input, shape index: {}]   ;;  %s1183_s10 = inlined_call_operand.vmem [shape: f32[1,128], index: 10, kind: input, shape index: {}]   ;;  %s1184_s11 = inlined_call_operand.vmem [shape: f32[16,128], index: 11, kind: output, shape index: {}]  }
   0x1   :  { %17 = vsyncpa [#allocation5], 0 }
   0x2   :  { %18 = vsyncpa [#allocation8], 0 }
   0x3   :  { %19 = vsyncpa [#allocation11], 0  ;;  %s1003_s17 = smov [#allocation4]  }
   0x4   :  { %s37_s18 = sshll.u32 %s1003_s17, 4  ;;  %s38_s18 = int_to_ptr.vmem [resolvable:$true] %s37_s18 }
   0x5   :  { %s883_s19 = scalar_lea.vmem %s38_s18, 256  ;;  %p888_p1 = scmp.lt.s32.totalorder %s38_s18, %s38_s18 }
   0x6   :  { %p884_p0 = scmp.ne.s32.totalorder %s38_s18, %s883_s19  ;;  %p889_p2 = scmp.lt.s32.totalorder %s883_s19, %s883_s19 }
   0x8   :  { %p890_p3 = por %p889_p2, %p888_p1 }
   0xa   :  { %p891_p4 = pnand %p890_p3, %p884_p0 }
   0xc   :  { %894 = shalt.err (!%p891_p4)
}
   0xd   :  { %s1004_s20 = smov 64   ;;  %s1005_s21 = smov 4  }
   0xe   :  { %43 = dma.hbm_to_vmem [thread:$0]  %s1174_s1, 256, %s38_s18, [#allocation5], %s1004_s20, %s1004_s20, %s1005_s21  }
   0xf   :  { %s1006_s24 = smov [#allocation7]   ;;  %s1007_s26 = smov [#allocation2]  }
  0x10   :  { %s65_s25 = sshll.u32 %s1006_s24, 4  ;;  %s25_s27 = sshll.u32 %s1007_s26, 4  ;;  %s66_s25 = int_to_ptr.vmem [resolvable:$true] %s65_s25  ;;  %s26_s27 = int_to_ptr.vmem [resolvable:$true] %s25_s27 }
  0x11   :  { %s903_s28 = scalar_lea.vmem %s66_s25, 1024  ;;  %p908_p6 = scmp.lt.s32.totalorder %s66_s25, %s66_s25 }
  0x12   :  { %p904_p5 = scmp.ne.s32.totalorder %s66_s25, %s903_s28  ;;  %p909_p7 = scmp.lt.s32.totalorder %s903_s28, %s903_s28 }
  0x14   :  { %p910_p8 = por %p909_p7, %p908_p6 }
  0x16   :  { %p911_p9 = pnand %p910_p8, %p904_p5 }
  0x18   :  { %914 = shalt.err (!%p911_p9)
}
  0x19   :  { %71 = dma.hbm_to_vmem [thread:$0]  %s1178_s5, 1024, %s66_s25, [#allocation8], %s1004_s20, %s1004_s20, %s1005_s21  }
  0x1a   :  { %s923_s1 = scalar_lea.vmem %s26_s27, 256  ;;  %p928_p11 = scmp.lt.s32.totalorder %s26_s27, %s26_s27 }
  0x1b   :  { %p924_p10 = scmp.ne.s32.totalorder %s26_s27, %s923_s1  ;;  %p929_p12 = scmp.lt.s32.totalorder %s923_s1, %s923_s1 }
  0x1d   :  { %p930_p13 = por %p929_p12, %p928_p11 }
  0x1f   :  { %p931_p0 = pnand %p930_p13, %p924_p10 }
  0x21   :  { %934 = shalt.err (!%p931_p0)
}
  0x22   :  { %s1008_s12 = smov 128   ;;  %s1009_s13 = smov 8  }
  0x23   :  { %31 = dma.hbm_to_vmem [thread:$0]  %s1173_s0, 256, %s26_s27, [#allocation3], %s1008_s12, %s1008_s12, %s1009_s13  }
  0x24   :  { %s1010_s16 = smov [#allocation6]   ;;  %s1011_s18 = smov [#allocation9]  }
  0x25   :  { %s51_s17 = sshll.u32 %s1010_s16, 4  ;;  %s79_s19 = sshll.u32 %s1011_s18, 4  ;;  %s52_s17 = int_to_ptr.vmem [resolvable:$true] %s51_s17  ;;  %s80_s19 = int_to_ptr.vmem [resolvable:$true] %s79_s19 }
  0x26   :  { %s943_s5 = scalar_lea.vmem %s52_s17, 1024  ;;  %p948_p2 = scmp.lt.s32.totalorder %s52_s17, %s52_s17 }
  0x27   :  { %p944_p1 = scmp.ne.s32.totalorder %s52_s17, %s943_s5  ;;  %p949_p3 = scmp.lt.s32.totalorder %s943_s5, %s943_s5 }
  0x29   :  { %p950_p4 = por %p949_p3, %p948_p2 }
  0x2b   :  { %p951_p5 = pnand %p950_p4, %p944_p1 }
  0x2d   :  { %954 = shalt.err (!%p951_p5)
}
  0x2e   :  { %57 = dma.hbm_to_vmem [thread:$0]  %s1176_s3, 1024, %s52_s17, [#allocation5], %s1004_s20, %s1004_s20, %s1005_s21  }
  0x2f   :  { %s963_s0 = scalar_lea.vmem %s80_s19, 1024  ;;  %p968_p7 = scmp.lt.s32.totalorder %s80_s19, %s80_s19 }
  0x30   :  { %p964_p6 = scmp.ne.s32.totalorder %s80_s19, %s963_s0  ;;  %p969_p8 = scmp.lt.s32.totalorder %s963_s0, %s963_s0 }
  0x32   :  { %p970_p9 = por %p969_p8, %p968_p7 }
  0x34   :  { %p971_p10 = pnand %p970_p9, %p964_p6 }
  0x36   :  { %974 = shalt.err (!%p971_p10)
}
  0x37   :  { %85 = dma.hbm_to_vmem [thread:$0]  %s1180_s7, 1024, %s80_s19, [#allocation8], %s1004_s20, %s1004_s20, %s1005_s21  }
  0x38   :  { %s1012_s26 = smov [#allocation10]  }
  0x39   :  { %s93_s27 = sshll.u32 %s1012_s26, 4  ;;  %s94_s27 = int_to_ptr.vmem [resolvable:$true] %s93_s27 }
  0x3a   :  { %s983_s28 = scalar_lea.vmem %s94_s27, 1024  ;;  %p988_p12 = scmp.lt.s32.totalorder %s94_s27, %s94_s27 }
  0x3b   :  { %p984_p11 = scmp.ne.s32.totalorder %s94_s27, %s983_s28  ;;  %p989_p13 = scmp.lt.s32.totalorder %s983_s28, %s983_s28 }
  0x3d   :  { %p990_p0 = por %p989_p13, %p988_p12 }
  0x3f   :  { %p991_p1 = pnand %p990_p0, %p984_p11 }
  0x41   :  { %994 = shalt.err (!%p991_p1)
}
  0x42   :  { %99 = dma.hbm_to_vmem [thread:$0]  %s1182_s9, 1024, %s94_s27, [#allocation11], %s1004_s20, %s1004_s20, %s1005_s21  }
  0x43   :  { %995 = dma.done.wait [#allocation3], 256  }
  0x44   :  { %996 = vsyncadd [#allocation3], 4294967040 }
  0x45   :  { %997 = dma.done.wait [#allocation5], 1280  }
  0x46   :  { %998 = vsyncadd [#allocation5], 4294966016 }
  0x47   :  { %999 = dma.done.wait [#allocation8], 2048  }
  0x48   :  { %1000 = vsyncadd [#allocation8], 4294965248 }
  0x49   :  { %1001 = dma.done.wait [#allocation11], 1024  }
  0x4a   :  { %1002 = vsyncadd [#allocation11], 4294966272  ;;  %v1013_v0 = vmov 0.0   ;;  %vm1014_vm0 = vmmov 0   ;;  %v841_v1 = vld [vmem:[#allocation4 + $0x8] sm:$0xff]   ;;  %v842_v2 = vld [vmem:[#allocation4] sm:$0xff]  }
  0x4b   :  { %741 = vmatprep.subr.bf16.mxu0 %v1013_v0  ;;  %745 = vmatprep.mubr.msk.bf16.mxu0 %vm1014_vm0, %v1013_v0  ;;  %v121_v3 = vld [vmem:[#allocation2] sm:$0xff]  ;;  %v122_v4 = vld [vmem:[#allocation2 + $0x8] sm:$0xff]  ;;  %v843_v5 = vld [vmem:[#allocation6 + $0x38] sm:$0xff]   ;;  %vm147_vm1 = vcmask 261120  }
  0x4c   :  { %749 = vmatprep.subr.bf16.mxu1 %v1013_v0  ;;  %765 = vmatprep.mubr.msk.bf16.mxu1 %vm1014_vm0, %v1013_v0  ;;  %v123_v6 = vpack.c.bf16 %v122_v4, %v121_v3  ;;  %v844_v7 = vld [vmem:[#allocation6 + $0x30] sm:$0xff]   ;;  %v845_v8 = vld [vmem:[#allocation6 + $0x28] sm:$0xff]   ;;  %v846_v9 = vld [vmem:[#allocation6 + $0x20] sm:$0xff]  }
  0x4d   :  { %742 = vmatpush3.bf16.msra.mxu0 %v841_v1  ;;  %750 = vmatpush3.bf16.msra.mxu1 %v843_v5  ;;  %v847_v10 = vld [vmem:[#allocation6 + $0x18] sm:$0xff]   ;;  %v848_v11 = vld [vmem:[#allocation6 + $0x10] sm:$0xff]   ;;  %v849_v12 = vld [vmem:[#allocation6 + $0x8] sm:$0xff]  }
  0x4e   :  { %743 = vmatprep.subr.bf16.mxu0 %v1013_v0  ;;  %751 = vmatprep.subr.bf16.mxu1 %v1013_v0  ;;  %v850_v13 = vld [vmem:[#allocation6] sm:$0xff]   ;;  %v851_v14 = vld [vmem:[#allocation7 + $0x38] sm:$0xff]   ;;  %v852_v15 = vld [vmem:[#allocation7 + $0x30] sm:$0xff]  }
  0x4f   :  { %v853_v16 = vld [vmem:[#allocation7 + $0x28] sm:$0xff]   ;;  %v854_v17 = vld [vmem:[#allocation7 + $0x20] sm:$0xff]   ;;  %v855_v18 = vld [vmem:[#allocation7 + $0x18] sm:$0xff]  }
  0x50   :  { %v662_v19 = vld [vmem:[%s1175_s2] ss:$0 sm:$0xff]  ;;  %v856_v29 = vld [vmem:[#allocation7 + $0x10] sm:$0xff]   ;;  %v857_v30 = vld [vmem:[#allocation7 + $0x8] sm:$0xff]  }
  0x51   :  { %744 = vmatpush3.bf16.msra.mxu0 %v842_v2  ;;  %752 = vmatpush3.bf16.msra.mxu1 %v844_v7  ;;  %v858_v31 = vld [vmem:[#allocation7] sm:$0xff]   ;;  %v859_v32 = vld [vmem:[#allocation9 + $0x38] sm:$0xff]   ;;  %v860_v33 = vld [vmem:[#allocation9 + $0x30] sm:$0xff]  }
  0x52   :  { %769 = vmatprep.subr.bf16.mxu0 %v1013_v0  ;;  %753 = vmatprep.subr.bf16.mxu1 %v1013_v0  ;;  %v861_v34 = vld [vmem:[#allocation9 + $0x28] sm:$0xff]   ;;  %v862_v35 = vld [vmem:[#allocation9 + $0x20] sm:$0xff]   ;;  %v863_v36 = vld [vmem:[#allocation9 + $0x18] sm:$0xff]  }
  0x53   :  { %v666_v37 = vld [vmem:[%s1177_s4] ss:$0 sm:$0xff]  ;;  %v864_v47 = vld [vmem:[#allocation9 + $0x10] sm:$0xff]   ;;  %v865_v48 = vld [vmem:[#allocation9 + $0x8] sm:$0xff]  }
  0x54   :  { %746 = vmatmul.mubr.msk.bf16.vlgmr.msra.gmra.mxu0 %vm147_vm1, %v123_v6  ;;  %v866_v49 = vld [vmem:[#allocation9] sm:$0xff]   ;;  %v867_v50 = vld [vmem:[#allocation10 + $0x38] sm:$0xff]   ;;  %v868_v51 = vld [vmem:[#allocation10 + $0x30] sm:$0xff]  }
  0x55   :  { %785 = vmatprep.mubr.msk.bf16.mxu0 %vm1014_vm0, %v1013_v0  ;;  %754 = vmatpush3.bf16.msra.mxu1 %v845_v8  ;;  %v869_v52 = vld [vmem:[#allocation10 + $0x28] sm:$0xff]   ;;  %v870_v53 = vld [vmem:[#allocation10 + $0x20] sm:$0xff]   ;;  %v871_v54 = vld [vmem:[#allocation10 + $0x18] sm:$0xff]  }
  0x56   :  { %755 = vmatprep.subr.bf16.mxu1 %v1013_v0  ;;  %770 = vmatpush3.bf16.msra.mxu0 %v851_v14  ;;  %v675_v55 = vld [vmem:[%s1179_s6] ss:$0 sm:$0xff]  ;;  %v872_v2 = vld [vmem:[#allocation10 + $0x10] sm:$0xff]   ;;  %v873_v3 = vld [vmem:[#allocation10 + $0x8] sm:$0xff]  }
  0x57   :  { %771 = vmatprep.subr.bf16.mxu0 %v1013_v0  ;;  %v874_v4 = vld [vmem:[#allocation10] sm:$0xff]  }
  0x58   :  { %v684_v5 = vld [vmem:[%s1181_s8] ss:$0 sm:$0xff] }
  0x59   :  { %756 = vmatpush3.bf16.msra.mxu1 %v846_v9 }
  0x5a   :  { %757 = vmatprep.subr.bf16.mxu1 %v1013_v0  ;;  %772 = vmatpush3.bf16.msra.mxu0 %v852_v15 }
  0x5b   :  { %773 = vmatprep.subr.bf16.mxu0 %v1013_v0 }
  0x5d   :  { %758 = vmatpush3.bf16.msra.mxu1 %v847_v10 }
  0x5e   :  { %759 = vmatprep.subr.bf16.mxu1 %v1013_v0  ;;  %774 = vmatpush3.bf16.msra.mxu0 %v853_v16 }
  0x5f   :  { %775 = vmatprep.subr.bf16.mxu0 %v1013_v0 }
  0x61   :  { %760 = vmatpush3.bf16.msra.mxu1 %v848_v11 }
  0x62   :  { %761 = vmatprep.subr.bf16.mxu1 %v1013_v0  ;;  %776 = vmatpush3.bf16.msra.mxu0 %v854_v17 }
  0x63   :  { %777 = vmatprep.subr.bf16.mxu0 %v1013_v0 }
  0x65   :  { %762 = vmatpush3.bf16.msra.mxu1 %v849_v12 }
  0x66   :  { %763 = vmatprep.subr.bf16.mxu1 %v1013_v0  ;;  %778 = vmatpush3.bf16.msra.mxu0 %v855_v18 }
  0x67   :  { %779 = vmatprep.subr.bf16.mxu0 %v1013_v0 }
  0x69   :  { %764 = vmatpush3.bf16.msra.mxu1 %v850_v13 }
  0x6a   :  { %789 = vmatprep.subr.bf16.mxu1 %v1013_v0  ;;  %780 = vmatpush3.bf16.msra.mxu0 %v856_v29 }
  0x6b   :  { %781 = vmatprep.subr.bf16.mxu0 %v1013_v0 }
  0x6e   :  { %782 = vmatpush3.bf16.msra.mxu0 %v857_v30 }
  0x6f   :  { %783 = vmatprep.subr.bf16.mxu0 %v1013_v0 }
  0x72   :  { %784 = vmatpush3.bf16.msra.mxu0 %v858_v31 }
  0x73   :  { %809 = vmatprep.subr.bf16.mxu0 %v1013_v0 }
 0x114   :  { %v185_v20 = vpop.f32.mrf.mxu0 }
 0x115   :  { %v186_v22 = vadd.f32 %v662_v19, %v185_v20 }
 0x116   :  { %v747_v21 = vpop.f32.mrf.mxu0 }
 0x117   :  { %v192_v26 = vmax.f32 %v186_v22, 0.0 }
 0x118   :  { %v188_v23 = vpop.f32.mrf.mxu0 }
 0x119   :  { %v189_v24 = vadd.f32 %v662_v19, %v188_v23 }
 0x11a   :  { %v748_v25 = vpop.f32.mrf.mxu0 }
 0x11b   :  { %v193_v27 = vmax.f32 %v189_v24, 0.0 }
 0x11d   :  { %v194_v28 = vpack.c.bf16 %v193_v27, %v192_v26 }
 0x11f   :  { %766 = vmatmul.mubr.bf16.vlgmr.msra.gmra.mxu1 %v194_v28 }
 0x120   :  { %805 = vmatprep.mubr.msk.bf16.mxu1 %vm1014_vm0, %v1013_v0  ;;  %790 = vmatpush3.bf16.msra.mxu1 %v859_v32 }
 0x121   :  { %791 = vmatprep.subr.bf16.mxu1 %v1013_v0 }
 0x124   :  { %792 = vmatpush3.bf16.msra.mxu1 %v860_v33 }
 0x125   :  { %793 = vmatprep.subr.bf16.mxu1 %v1013_v0 }
 0x128   :  { %794 = vmatpush3.bf16.msra.mxu1 %v861_v34 }
 0x129   :  { %795 = vmatprep.subr.bf16.mxu1 %v1013_v0 }
 0x12c   :  { %796 = vmatpush3.bf16.msra.mxu1 %v862_v35 }
 0x12d   :  { %797 = vmatprep.subr.bf16.mxu1 %v1013_v0 }
 0x130   :  { %798 = vmatpush3.bf16.msra.mxu1 %v863_v36 }
 0x131   :  { %799 = vmatprep.subr.bf16.mxu1 %v1013_v0 }
 0x134   :  { %800 = vmatpush3.bf16.msra.mxu1 %v864_v47 }
 0x135   :  { %801 = vmatprep.subr.bf16.mxu1 %v1013_v0 }
 0x138   :  { %802 = vmatpush3.bf16.msra.mxu1 %v865_v48 }
 0x139   :  { %803 = vmatprep.subr.bf16.mxu1 %v1013_v0 }
 0x13c   :  { %804 = vmatpush3.bf16.msra.mxu1 %v866_v49 }
 0x1df   :  { %v300_v38 = vpop.f32.mrf.mxu1 }
 0x1e0   :  { %v301_v40 = vadd.f32 %v666_v37, %v300_v38 }
 0x1e1   :  { %v767_v39 = vpop.f32.mrf.mxu1 }
 0x1e2   :  { %v307_v44 = vmax.f32 %v301_v40, 0.0 }
 0x1e3   :  { %v303_v41 = vpop.f32.mrf.mxu1 }
 0x1e4   :  { %v304_v42 = vadd.f32 %v666_v37, %v303_v41 }
 0x1e5   :  { %v768_v43 = vpop.f32.mrf.mxu1 }
 0x1e6   :  { %v308_v45 = vmax.f32 %v304_v42, 0.0 }
 0x1e8   :  { %v309_v46 = vpack.c.bf16 %v308_v45, %v307_v44 }
 0x1ea   :  { %786 = vmatmul.mubr.bf16.vlgmr.msra.gmra.mxu0 %v309_v46 }
 0x1eb   :  { %825 = vmatprep.mubr.msk.bf16.mxu0 %vm1014_vm0, %v1013_v0  ;;  %810 = vmatpush3.bf16.msra.mxu0 %v867_v50 }
 0x1ec   :  { %811 = vmatprep.subr.bf16.mxu0 %v1013_v0 }
 0x1ef   :  { %812 = vmatpush3.bf16.msra.mxu0 %v868_v51 }
 0x1f0   :  { %813 = vmatprep.subr.bf16.mxu0 %v1013_v0 }
 0x1f3   :  { %814 = vmatpush3.bf16.msra.mxu0 %v869_v52 }
 0x1f4   :  { %815 = vmatprep.subr.bf16.mxu0 %v1013_v0 }
 0x1f7   :  { %816 = vmatpush3.bf16.msra.mxu0 %v870_v53 }
 0x1f8   :  { %817 = vmatprep.subr.bf16.mxu0 %v1013_v0 }
 0x1fb   :  { %818 = vmatpush3.bf16.msra.mxu0 %v871_v54 }
 0x1fc   :  { %819 = vmatprep.subr.bf16.mxu0 %v1013_v0 }
 0x1ff   :  { %820 = vmatpush3.bf16.msra.mxu0 %v872_v2 }
 0x200   :  { %821 = vmatprep.subr.bf16.mxu0 %v1013_v0 }
 0x203   :  { %822 = vmatpush3.bf16.msra.mxu0 %v873_v3 }
 0x204   :  { %823 = vmatprep.subr.bf16.mxu0 %v1013_v0  ;;  %v693_v0 = vld [vmem:[%s1183_s10] ss:$0 sm:$0xff] }
 0x207   :  { %824 = vmatpush3.bf16.msra.mxu0 %v874_v4 }
 0x2aa   :  { %v415_v56 = vpop.f32.mrf.mxu0 }
 0x2ab   :  { %v416_v58 = vadd.f32 %v675_v55, %v415_v56 }
 0x2ac   :  { %v787_v57 = vpop.f32.mrf.mxu0 }
 0x2ad   :  { %v422_v62 = vmax.f32 %v416_v58, 0.0 }
 0x2ae   :  { %v418_v59 = vpop.f32.mrf.mxu0 }
 0x2af   :  { %v419_v60 = vadd.f32 %v675_v55, %v418_v59 }
 0x2b0   :  { %v788_v61 = vpop.f32.mrf.mxu0 }
 0x2b1   :  { %v423_v63 = vmax.f32 %v419_v60, 0.0 }
 0x2b3   :  { %v424_v1 = vpack.c.bf16 %v423_v63, %v422_v62 }
 0x2b5   :  { %806 = vmatmul.mubr.bf16.vlgmr.msra.gmra.mxu1 %v424_v1 }
 0x375   :  { %v530_v6 = vpop.f32.mrf.mxu1 }
 0x376   :  { %v531_v8 = vadd.f32 %v684_v5, %v530_v6 }
 0x377   :  { %v807_v7 = vpop.f32.mrf.mxu1 }
 0x378   :  { %v537_v12 = vmax.f32 %v531_v8, 0.0 }
 0x379   :  { %v533_v9 = vpop.f32.mrf.mxu1 }
 0x37a   :  { %v534_v10 = vadd.f32 %v684_v5, %v533_v9 }
 0x37b   :  { %v808_v11 = vpop.f32.mrf.mxu1 }
 0x37c   :  { %v538_v13 = vmax.f32 %v534_v10, 0.0 }
 0x37e   :  { %v539_v14 = vpack.c.bf16 %v538_v13, %v537_v12 }
 0x380   :  { %826 = vmatmul.mubr.bf16.vlgmr.msra.gmra.mxu0 %v539_v14 }
 0x440   :  { %v645_v15 = vpop.f32.mrf.mxu0 }
 0x441   :  { %v646_v16 = vadd.f32 %v693_v0, %v645_v15 }
 0x442   :  { %v827_v17 = vpop.f32.mrf.mxu0 }
 0x443   :  { %652 = vst [vmem:[%s1184_s11] sm:$0xff] %v646_v16 }
 0x444   :  { %v648_v18 = vpop.f32.mrf.mxu0 }
 0x445   :  { %v649_v19 = vadd.f32 %v693_v0, %v648_v18 }
 0x446   :  { %v828_v20 = vpop.f32.mrf.mxu0 }
 0x447   :  { %653 = vst [vmem:[%s1184_s11 + $0x8] sm:$0xff] %v649_v19 }
 0x448   :  { %658 = vsyncpa [#allocation3], 1 }
 0x449   :  { %659 = vsyncpa [#allocation5], 1 }
 0x44a   :  { %660 = vsyncpa [#allocation8], 1 }
 0x44b   :  { %661 = vsyncpa [#allocation11], 1 }

</bundles_post_ra>
